<compile_context>
chip_gen: v7x
topology: tpu7x:2x2x1
jax: 0.10.0
libtpu: 0.0.40
codegen_flags: <defaults>
</compile_context>

<pallas_src>
import functools

import jax
import jax.numpy as jnp
from jax import lax
from jax.experimental import pallas as pl
from jax.experimental.pallas import tpu as pltpu

_EPS = 1e-5
_LANE = 128
_SUBLANE = 8


def _round_up(x, m):
    return ((x + m - 1) // m) * m


def _film_block_kernel(
    control_ref, drug_ref, logdose_ref, wpack_ref, vpack_ref,
    out_ref,
    *, dims, woff,
):
    drug_dim, h0, h1, C, H = dims
    o_drug, o_m1, o_m2g, o_m2b, o_f1, o_f2 = woff

    ctrl = control_ref[...]          # (B, C)
    drug = drug_ref[...]             # (B, drug_dim)
    ldose = logdose_ref[...]         # (B, 1)

    # --- packed 1-row vectors (static, lane-0-aligned slices) ---
    wm0_dose = vpack_ref[0:1, :h0]   # log-dose row of the first modulator layer
    bm0 = vpack_ref[1:2, :h0]
    bm1 = vpack_ref[2:3, :h1]
    bm2_g = vpack_ref[3:4, :C]
    bm2_b = vpack_ref[4:5, :C]
    g1 = vpack_ref[5:6, :H]
    be1 = vpack_ref[6:7, :H]
    g2 = vpack_ref[7:8, :C]
    be2 = vpack_ref[8:9, :C]

    # --- FiLMModulator MLP (concat folded in) ---
    h = (jnp.dot(drug, wpack_ref[o_drug:o_drug + drug_dim, :h0],
                 preferred_element_type=jnp.float32)
         + ldose * wm0_dose + bm0)
    h = jnp.maximum(h, 0.0)
    h = jnp.dot(h, wpack_ref[o_m1:o_m1 + h0, :h1],
                preferred_element_type=jnp.float32) + bm1
    h = jnp.maximum(h, 0.0)
    # gamma / beta: two lane-aligned matmuls (== torch.chunk(mod, 2, -1))
    gamma = jnp.dot(h, wpack_ref[o_m2g:o_m2g + h1, :C],
                    preferred_element_type=jnp.float32) + bm2_g
    beta = jnp.dot(h, wpack_ref[o_m2b:o_m2b + h1, :C],
                   preferred_element_type=jnp.float32) + bm2_b

    # --- FiLM modulation ---
    modulated = gamma * ctrl + beta

    inv_b = 1.0 / ctrl.shape[0]

    # --- fc1 + BN1 (fused batch-stat scale/shift) + ReLU ---
    # fc1 bias omitted: cancelled exactly by BN's mean subtraction.
    o1 = jnp.dot(modulated, wpack_ref[o_f1:o_f1 + C, :H],
                 preferred_element_type=jnp.float32)
    m1 = jnp.sum(o1, axis=0, keepdims=True) * inv_b
    v1 = jnp.maximum(jnp.sum(o1 * o1, axis=0, keepdims=True) * inv_b - m1 * m1, 0.0)
    s1 = g1 * lax.rsqrt(v1 + _EPS)
    t1 = be1 - m1 * s1
    a1 = jnp.maximum(o1 * s1 + t1, 0.0)

    # --- fc2 + BN2 (fused) + residual ---
    o2 = jnp.dot(a1, wpack_ref[o_f2:o_f2 + H, :C],
                 preferred_element_type=jnp.float32)
    m2 = jnp.sum(o2, axis=0, keepdims=True) * inv_b
    v2 = jnp.maximum(jnp.sum(o2 * o2, axis=0, keepdims=True) * inv_b - m2 * m2, 0.0)
    s2 = g2 * lax.rsqrt(v2 + _EPS)
    t2 = be2 - m2 * s2
    out_ref[...] = o2 * s2 + t2 + ctrl


def film_residual_block(control_emb, drug_emb, logdose, packed):
    """5-input, single-invocation (un-gridded) kernel; everything fits in VMEM."""
    B, C = control_emb.shape
    vmem = pl.BlockSpec(memory_space=pltpu.MemorySpace.VMEM)
    return pl.pallas_call(
        functools.partial(_film_block_kernel,
                          dims=packed["dims"], woff=packed["woff"]),
        out_shape=jax.ShapeDtypeStruct((B, C), jnp.float32),
        in_specs=[vmem] * 5,
        out_specs=vmem,
    )(control_emb, drug_emb, logdose, packed["wpack"], packed["vpack"])


def init_params(key, control_dim, drug_dim, hidden_dim, modulator_hidden_dims):
    """Deterministic synthetic parameters (PyTorch-style init).  Linear weights
    are stored already transposed to (in, out) so x @ W + b == torch x @ W.T + b."""
    assert len(modulator_hidden_dims) == 2, "kernel is specialized to 2 modulator hidden layers"
    h0, h1 = modulator_hidden_dims
    d_in = drug_dim + 1
    ks = jax.random.split(key, 12)

    def lin(k, fan_in, fan_out):
        bound = 1.0 / jnp.sqrt(fan_in)
        kw, kb = jax.random.split(k)
        w = jax.random.uniform(kw, (fan_in, fan_out), jnp.float32, -bound, bound)
        b = jax.random.uniform(kb, (1, fan_out), jnp.float32, -bound, bound)
        return w, b

    wm0, bm0 = lin(ks[0], d_in, h0)
    wm1, bm1 = lin(ks[1], h0, h1)
    wm2, bm2 = lin(ks[2], h1, 2 * control_dim)
    wf1, bf1 = lin(ks[3], control_dim, hidden_dim)
    wf2, bf2 = lin(ks[4], hidden_dim, control_dim)
    # BatchNorm affine params (perturbed away from identity to exercise the math)
    g1 = 1.0 + 0.1 * jax.random.normal(ks[5], (1, hidden_dim), jnp.float32)
    be1 = 0.1 * jax.random.normal(ks[6], (1, hidden_dim), jnp.float32)
    g2 = 1.0 + 0.1 * jax.random.normal(ks[7], (1, control_dim), jnp.float32)
    be2 = 0.1 * jax.random.normal(ks[8], (1, control_dim), jnp.float32)

    return dict(wm0=wm0, bm0=bm0, wm1=wm1, bm1=bm1, wm2=wm2, bm2=bm2,
                wf1=wf1, bf1=bf1, wf2=wf2, bf2=bf2,
                g1=g1, be1=be1, g2=g2, be2=be2)


def pack_params(p, control_dim, drug_dim, hidden_dim, modulator_hidden_dims):
    """One-time packing: weights -> one sublane-aligned 2D pack, vectors -> one
    lane-padded row pack.  bf1/bf2 are intentionally excluded (BN cancels them)."""
    h0, h1 = modulator_hidden_dims
    C, H = control_dim, hidden_dim
    dims = (drug_dim, h0, h1, C, H)

    wm0_drug = p["wm0"][:drug_dim, :]                # (drug_dim, h0)
    wm0_dose = p["wm0"][drug_dim:drug_dim + 1, :]    # (1, h0) log-dose row
    wm2_g = p["wm2"][:, :C]
    wm2_b = p["wm2"][:, C:]

    lane_pad = _round_up(max(h0, h1, C, H), _LANE)

    blocks = [wm0_drug, p["wm1"], wm2_g, wm2_b, p["wf1"], p["wf2"]]
    offs, rows = [], 0
    for blk in blocks:
        offs.append(rows)
        rows += _round_up(blk.shape[0], _SUBLANE)
    wpack = jnp.zeros((rows, lane_pad), jnp.float32)
    for off, blk in zip(offs, blocks):
        wpack = wpack.at[off:off + blk.shape[0], :blk.shape[1]].set(blk)

    vecs = [wm0_dose, p["bm0"], p["bm1"], p["bm2"][:, :C], p["bm2"][:, C:],
            p["g1"], p["be1"], p["g2"], p["be2"]]
    vpack = jnp.zeros((len(vecs), lane_pad), jnp.float32)
    for i, v in enumerate(vecs):
        vpack = vpack.at[i:i + 1, :v.shape[1]].set(v)

    return dict(wpack=wpack, vpack=vpack, dims=dims, woff=tuple(offs))


def reference_forward(control_emb, drug_emb, logdose, p):
    """Pure-JAX reference mirroring the PyTorch forward (training-mode BN),
    including the fc biases and the two-pass variance."""
    x = jnp.concatenate([drug_emb, logdose], axis=-1)
    h = jnp.maximum(x @ p["wm0"] + p["bm0"], 0.0)
    h = jnp.maximum(h @ p["wm1"] + p["bm1"], 0.0)
    mod = h @ p["wm2"] + p["bm2"]
    C = control_emb.shape[1]
    gamma, beta = mod[:, :C], mod[:, C:]
    modulated = gamma * control_emb + beta
    o1 = modulated @ p["wf1"] + p["bf1"]
    m1 = o1.mean(0, keepdims=True)
    v1 = ((o1 - m1) ** 2).mean(0, keepdims=True)
    o1 = jnp.maximum((o1 - m1) / jnp.sqrt(v1 + _EPS) * p["g1"] + p["be1"], 0.0)
    o2 = o1 @ p["wf2"] + p["bf2"]
    m2 = o2.mean(0, keepdims=True)
    v2 = ((o2 - m2) ** 2).mean(0, keepdims=True)
    o2 = (o2 - m2) / jnp.sqrt(v2 + _EPS) * p["g2"] + p["be2"]
    return o2 + control_emb


if __name__ == "__main__":
    # small shapes consistent with the module's forward()
    batch = 8
    control_dim = 16
    drug_dim = 8
    hidden_dim = 32
    modulator_hidden_dims = [16, 16]

    key = jax.random.PRNGKey(0)
    k_c, k_d, k_l, k_p = jax.random.split(key, 4)
    control_emb = jax.random.normal(k_c, (batch, control_dim), jnp.float32)
    drug_emb = jax.random.normal(k_d, (batch, drug_dim), jnp.float32)
    logdose = jax.random.normal(k_l, (batch, 1), jnp.float32)

    params = init_params(k_p, control_dim, drug_dim, hidden_dim, modulator_hidden_dims)
    packed = pack_params(params, control_dim, drug_dim, hidden_dim, modulator_hidden_dims)

    out = film_residual_block(control_emb, drug_emb, logdose, packed)
    out = jax.block_until_ready(out)

    ref = reference_forward(control_emb, drug_emb, logdose, params)
    assert out.shape == (batch, control_dim)
    assert jnp.allclose(out, ref, atol=1e-4, rtol=1e-4), "mismatch vs reference"

    print("KERNEL_OK")
</pallas_src>

<mosaic_0001>
module attributes {stable_mosaic.version = 11 : i64} {
  func.func @_film_block_kernel(%arg0: memref<8x16xf32, #tpu.memory_space<vmem>>, %arg1: memref<8x8xf32, #tpu.memory_space<vmem>>, %arg2: memref<8x1xf32, #tpu.memory_space<vmem>>, %arg3: memref<104x128xf32, #tpu.memory_space<vmem>>, %arg4: memref<9x128xf32, #tpu.memory_space<vmem>>, %arg5: memref<8x16xf32, #tpu.memory_space<vmem>>) attributes {dimension_semantics = [], scalar_prefetch = 0 : i64, scratch_operands = 0 : i64, tpu.core_type = #tpu.core_type<tc>} {
    %c0 = arith.constant 0 : index
    %c0_0 = arith.constant 0 : index
    %0 = vector.load %arg0[%c0, %c0_0] : memref<8x16xf32, #tpu.memory_space<vmem>>, vector<8x16xf32>
    %c0_1 = arith.constant 0 : index
    %c0_2 = arith.constant 0 : index
    %1 = vector.load %arg1[%c0_1, %c0_2] : memref<8x8xf32, #tpu.memory_space<vmem>>, vector<8x8xf32>
    %c0_3 = arith.constant 0 : index
    %c0_4 = arith.constant 0 : index
    %2 = vector.load %arg2[%c0_3, %c0_4] : memref<8x1xf32, #tpu.memory_space<vmem>>, vector<8x1xf32>
    %c0_5 = arith.constant 0 : index
    %c0_6 = arith.constant 0 : index
    %3 = vector.load %arg4[%c0_5, %c0_6] : memref<9x128xf32, #tpu.memory_space<vmem>>, vector<1x16xf32>
    %c1 = arith.constant 1 : index
    %c0_7 = arith.constant 0 : index
    %4 = vector.load %arg4[%c1, %c0_7] : memref<9x128xf32, #tpu.memory_space<vmem>>, vector<1x16xf32>
    %c2 = arith.constant 2 : index
    %c0_8 = arith.constant 0 : index
    %5 = vector.load %arg4[%c2, %c0_8] : memref<9x128xf32, #tpu.memory_space<vmem>>, vector<1x16xf32>
    %c3 = arith.constant 3 : index
    %c0_9 = arith.constant 0 : index
    %6 = vector.load %arg4[%c3, %c0_9] : memref<9x128xf32, #tpu.memory_space<vmem>>, vector<1x16xf32>
    %c4 = arith.constant 4 : index
    %c0_10 = arith.constant 0 : index
    %7 = vector.load %arg4[%c4, %c0_10] : memref<9x128xf32, #tpu.memory_space<vmem>>, vector<1x16xf32>
    %c5 = arith.constant 5 : index
    %c0_11 = arith.constant 0 : index
    %8 = vector.load %arg4[%c5, %c0_11] : memref<9x128xf32, #tpu.memory_space<vmem>>, vector<1x32xf32>
    %c6 = arith.constant 6 : index
    %c0_12 = arith.constant 0 : index
    %9 = vector.load %arg4[%c6, %c0_12] : memref<9x128xf32, #tpu.memory_space<vmem>>, vector<1x32xf32>
    %c7 = arith.constant 7 : index
    %c0_13 = arith.constant 0 : index
    %10 = vector.load %arg4[%c7, %c0_13] : memref<9x128xf32, #tpu.memory_space<vmem>>, vector<1x16xf32>
    %c8 = arith.constant 8 : index
    %c0_14 = arith.constant 0 : index
    %11 = vector.load %arg4[%c8, %c0_14] : memref<9x128xf32, #tpu.memory_space<vmem>>, vector<1x16xf32>
    %c0_15 = arith.constant 0 : index
    %c0_16 = arith.constant 0 : index
    %12 = vector.load %arg3[%c0_15, %c0_16] : memref<104x128xf32, #tpu.memory_space<vmem>>, vector<8x16xf32>
    %cst = arith.constant dense<0.000000e+00> : vector<8x16xf32>
    %13 = tpu.matmul %1, %12, %cst {dimension_numbers = #tpu.dot_dimension_numbers<[1], [0], [0], [1], [0, 0, 1, 1], [], []>} : vector<8x8xf32>, vector<8x16xf32>, vector<8x16xf32> -> vector<8x16xf32>
    %14 = vector.broadcast %2 : vector<8x1xf32> to vector<8x16xf32>
    %15 = vector.broadcast %3 : vector<1x16xf32> to vector<8x16xf32>
    %16 = arith.mulf %14, %15 : vector<8x16xf32>
    %17 = arith.addf %13, %16 : vector<8x16xf32>
    %18 = vector.broadcast %4 : vector<1x16xf32> to vector<8x16xf32>
    %19 = arith.addf %17, %18 : vector<8x16xf32>
    %cst_17 = arith.constant 0.000000e+00 : f32
    %20 = vector.broadcast %cst_17 : f32 to vector<8x16xf32>
    %21 = arith.maximumf %19, %20 : vector<8x16xf32>
    %c8_18 = arith.constant 8 : index
    %c0_19 = arith.constant 0 : index
    %22 = vector.load %arg3[%c8_18, %c0_19] : memref<104x128xf32, #tpu.memory_space<vmem>>, vector<16x16xf32>
    %cst_20 = arith.constant dense<0.000000e+00> : vector<8x16xf32>
    %23 = tpu.matmul %21, %22, %cst_20 {dimension_numbers = #tpu.dot_dimension_numbers<[1], [0], [0], [1], [0, 0, 1, 1], [], []>} : vector<8x16xf32>, vector<16x16xf32>, vector<8x16xf32> -> vector<8x16xf32>
    %24 = vector.broadcast %5 : vector<1x16xf32> to vector<8x16xf32>
    %25 = arith.addf %23, %24 : vector<8x16xf32>
    %cst_21 = arith.constant 0.000000e+00 : f32
    %26 = vector.broadcast %cst_21 : f32 to vector<8x16xf32>
    %27 = arith.maximumf %25, %26 : vector<8x16xf32>
    %c24 = arith.constant 24 : index
    %c0_22 = arith.constant 0 : index
    %28 = vector.load %arg3[%c24, %c0_22] : memref<104x128xf32, #tpu.memory_space<vmem>>, vector<16x16xf32>
    %cst_23 = arith.constant dense<0.000000e+00> : vector<8x16xf32>
    %29 = tpu.matmul %27, %28, %cst_23 {dimension_numbers = #tpu.dot_dimension_numbers<[1], [0], [0], [1], [0, 0, 1, 1], [], []>} : vector<8x16xf32>, vector<16x16xf32>, vector<8x16xf32> -> vector<8x16xf32>
    %30 = vector.broadcast %6 : vector<1x16xf32> to vector<8x16xf32>
    %31 = arith.addf %29, %30 : vector<8x16xf32>
    %c40 = arith.constant 40 : index
    %c0_24 = arith.constant 0 : index
    %32 = vector.load %arg3[%c40, %c0_24] : memref<104x128xf32, #tpu.memory_space<vmem>>, vector<16x16xf32>
    %cst_25 = arith.constant dense<0.000000e+00> : vector<8x16xf32>
    %33 = tpu.matmul %27, %32, %cst_25 {dimension_numbers = #tpu.dot_dimension_numbers<[1], [0], [0], [1], [0, 0, 1, 1], [], []>} : vector<8x16xf32>, vector<16x16xf32>, vector<8x16xf32> -> vector<8x16xf32>
    %34 = vector.broadcast %7 : vector<1x16xf32> to vector<8x16xf32>
    %35 = arith.addf %33, %34 : vector<8x16xf32>
    %36 = arith.mulf %31, %0 : vector<8x16xf32>
    %37 = arith.addf %36, %35 : vector<8x16xf32>
    %c56 = arith.constant 56 : index
    %c0_26 = arith.constant 0 : index
    %38 = vector.load %arg3[%c56, %c0_26] : memref<104x128xf32, #tpu.memory_space<vmem>>, vector<16x32xf32>
    %cst_27 = arith.constant dense<0.000000e+00> : vector<8x32xf32>
    %39 = tpu.matmul %37, %38, %cst_27 {dimension_numbers = #tpu.dot_dimension_numbers<[1], [0], [0], [1], [0, 0, 1, 1], [], []>} : vector<8x16xf32>, vector<16x32xf32>, vector<8x32xf32> -> vector<8x32xf32>
    %cst_28 = arith.constant dense<0.000000e+00> : vector<32xf32>
    %40 = vector.multi_reduction <add>, %39, %cst_28 [0] : vector<8x32xf32> to vector<32xf32>
    %41 = vector.shape_cast %40 : vector<32xf32> to vector<1x32xf32>
    %cst_29 = arith.constant 1.250000e-01 : f32
    %42 = vector.broadcast %cst_29 : f32 to vector<1x32xf32>
    %43 = arith.mulf %41, %42 : vector<1x32xf32>
    %44 = arith.mulf %39, %39 : vector<8x32xf32>
    %cst_30 = arith.constant dense<0.000000e+00> : vector<32xf32>
    %45 = vector.multi_reduction <add>, %44, %cst_30 [0] : vector<8x32xf32> to vector<32xf32>
    %46 = vector.shape_cast %45 : vector<32xf32> to vector<1x32xf32>
    %cst_31 = arith.constant 1.250000e-01 : f32
    %47 = vector.broadcast %cst_31 : f32 to vector<1x32xf32>
    %48 = arith.mulf %46, %47 : vector<1x32xf32>
    %49 = arith.mulf %43, %43 : vector<1x32xf32>
    %50 = arith.subf %48, %49 : vector<1x32xf32>
    %cst_32 = arith.constant 0.000000e+00 : f32
    %51 = vector.broadcast %cst_32 : f32 to vector<1x32xf32>
    %52 = arith.maximumf %50, %51 : vector<1x32xf32>
    %cst_33 = arith.constant 9.99999974E-6 : f32
    %53 = vector.broadcast %cst_33 : f32 to vector<1x32xf32>
    %54 = arith.addf %52, %53 : vector<1x32xf32>
    %55 = math.rsqrt %54 : vector<1x32xf32>
    %56 = arith.mulf %8, %55 : vector<1x32xf32>
    %57 = arith.mulf %43, %56 : vector<1x32xf32>
    %58 = arith.subf %9, %57 : vector<1x32xf32>
    %59 = vector.broadcast %56 : vector<1x32xf32> to vector<8x32xf32>
    %60 = arith.mulf %39, %59 : vector<8x32xf32>
    %61 = vector.broadcast %58 : vector<1x32xf32> to vector<8x32xf32>
    %62 = arith.addf %60, %61 : vector<8x32xf32>
    %cst_34 = arith.constant 0.000000e+00 : f32
    %63 = vector.broadcast %cst_34 : f32 to vector<8x32xf32>
    %64 = arith.maximumf %62, %63 : vector<8x32xf32>
    %c72 = arith.constant 72 : index
    %c0_35 = arith.constant 0 : index
    %65 = vector.load %arg3[%c72, %c0_35] : memref<104x128xf32, #tpu.memory_space<vmem>>, vector<32x16xf32>
    %cst_36 = arith.constant dense<0.000000e+00> : vector<8x16xf32>
    %66 = tpu.matmul %64, %65, %cst_36 {dimension_numbers = #tpu.dot_dimension_numbers<[1], [0], [0], [1], [0, 0, 1, 1], [], []>} : vector<8x32xf32>, vector<32x16xf32>, vector<8x16xf32> -> vector<8x16xf32>
    %cst_37 = arith.constant dense<0.000000e+00> : vector<16xf32>
    %67 = vector.multi_reduction <add>, %66, %cst_37 [0] : vector<8x16xf32> to vector<16xf32>
    %68 = vector.shape_cast %67 : vector<16xf32> to vector<1x16xf32>
    %cst_38 = arith.constant 1.250000e-01 : f32
    %69 = vector.broadcast %cst_38 : f32 to vector<1x16xf32>
    %70 = arith.mulf %68, %69 : vector<1x16xf32>
    %71 = arith.mulf %66, %66 : vector<8x16xf32>
    %cst_39 = arith.constant dense<0.000000e+00> : vector<16xf32>
    %72 = vector.multi_reduction <add>, %71, %cst_39 [0] : vector<8x16xf32> to vector<16xf32>
    %73 = vector.shape_cast %72 : vector<16xf32> to vector<1x16xf32>
    %cst_40 = arith.constant 1.250000e-01 : f32
    %74 = vector.broadcast %cst_40 : f32 to vector<1x16xf32>
    %75 = arith.mulf %73, %74 : vector<1x16xf32>
    %76 = arith.mulf %70, %70 : vector<1x16xf32>
    %77 = arith.subf %75, %76 : vector<1x16xf32>
    %cst_41 = arith.constant 0.000000e+00 : f32
    %78 = vector.broadcast %cst_41 : f32 to vector<1x16xf32>
    %79 = arith.maximumf %77, %78 : vector<1x16xf32>
    %cst_42 = arith.constant 9.99999974E-6 : f32
    %80 = vector.broadcast %cst_42 : f32 to vector<1x16xf32>
    %81 = arith.addf %79, %80 : vector<1x16xf32>
    %82 = math.rsqrt %81 : vector<1x16xf32>
    %83 = arith.mulf %10, %82 : vector<1x16xf32>
    %84 = arith.mulf %70, %83 : vector<1x16xf32>
    %85 = arith.subf %11, %84 : vector<1x16xf32>
    %86 = vector.broadcast %83 : vector<1x16xf32> to vector<8x16xf32>
    %87 = arith.mulf %66, %86 : vector<8x16xf32>
    %88 = vector.broadcast %85 : vector<1x16xf32> to vector<8x16xf32>
    %89 = arith.addf %87, %88 : vector<8x16xf32>
    %90 = arith.addf %89, %0 : vector<8x16xf32>
    %c0_43 = arith.constant 0 : index
    %c0_44 = arith.constant 0 : index
    %91 = vector.load %arg5[%c0_43, %c0_44] : memref<8x16xf32, #tpu.memory_space<vmem>>, vector<8x16xf32>
    tpu.vector_store %arg5[%c0_43, %c0_44], %90 {strides = array<i32>} : memref<8x16xf32, #tpu.memory_space<vmem>>, vector<8x16xf32>,
    return
  }
}

</mosaic_0001>

<bundles_post_ra>
// kernel: tpu_custom_call.1
= control target key start
LH: loop header
LB: loop body
LE: loop exit
PB: predicated region body
PF: predicated region fallthrough
CT: control target
= control target key end

     0   :  { %10 = vsyncpa [#allocation3], 0  ;;  %s943_s0 = inlined_call_operand.vmem [shape: f32[8,16], index: 0, kind: input, shape index: {}]   ;;  %s944_s1 = inlined_call_operand.hbm [shape: f32[8,8], index: 1, kind: input, shape index: {}]   ;;  %s945_s2 = inlined_call_operand.vmem [shape: f32[8,1], index: 2, kind: input, shape index: {}]   ;;  %s946_s3 = inlined_call_operand.hbm [shape: f32[104,128], index: 3, kind: input, shape index: {}]   ;;  %s947_s4 = inlined_call_operand.vmem [shape: f32[9,128], index: 4, kind: input, shape index: {}]   ;;  %s948_s5 = inlined_call_operand.hbm [shape: f32[8,16], index: 5, kind: output, shape index: {}]  }
   0x1   :  { %11 = vsyncpa [#allocation6], 0 }
   0x2   :  { %12 = vsyncpa [#allocation4], 0  ;;  %s808_s18 = smov [#allocation2]   ;;  %s809_s20 = smov [#allocation5]  }
   0x3   :  { %s21_s19 = sshll.u32 %s808_s18, 4  ;;  %s32_s21 = sshll.u32 %s809_s20, 4  ;;  %s22_s19 = int_to_ptr.vmem [resolvable:$true] %s21_s19  ;;  %s847_s21 = int_to_ptr.vmem [resolvable:$true] %s32_s21 }
   0x4   :  { %s736_s24 = scalar_lea.hbm %s944_s1, 128 }
   0x5   :  { %p737_p0 = scmp.ne.s32.totalorder %s944_s1, %s736_s24  ;;  %p740_p1 = scmp.lt.u32.totalorder %s736_s24, %s944_s1 }
   0x7   :  { %p742_p2 = pnand %p740_p1, %p737_p0 }
   0x9   :  { %745 = shalt.err (!%p742_p2)
}
   0xa   :  { %s746_s29 = scalar_lea.vmem %s22_s19, 128  ;;  %p751_p4 = scmp.lt.s32.totalorder %s22_s19, %s22_s19 }
   0xb   :  { %p747_p3 = scmp.ne.s32.totalorder %s22_s19, %s746_s29  ;;  %p752_p5 = scmp.lt.s32.totalorder %s746_s29, %s746_s29 }
   0xd   :  { %p753_p6 = por %p752_p5, %p751_p4 }
   0xf   :  { %p754_p7 = pnand %p753_p6, %p747_p3 }
  0x11   :  { %757 = shalt.err (!%p754_p7)
}
  0x12   :  { %24 = dma.hbm_to_vmem [thread:$0]  %s944_s1, 128, %s22_s19, [#allocation3]  }
  0x13   :  { %s758_s9 = scalar_lea.hbm %s946_s3, 1664 }
  0x14   :  { %p759_p8 = scmp.ne.s32.totalorder %s946_s3, %s758_s9  ;;  %p762_p9 = scmp.lt.u32.totalorder %s758_s9, %s946_s3 }
  0x16   :  { %p764_p10 = pnand %p762_p9, %p759_p8 }
  0x18   :  { %767 = shalt.err (!%p764_p10)
}
  0x19   :  { %s768_s14 = scalar_lea.vmem %s847_s21, 1664  ;;  %p773_p12 = scmp.lt.s32.totalorder %s847_s21, %s847_s21 }
  0x1a   :  { %p769_p11 = scmp.ne.s32.totalorder %s847_s21, %s768_s14  ;;  %p774_p13 = scmp.lt.s32.totalorder %s768_s14, %s768_s14 }
  0x1c   :  { %p775_p0 = por %p774_p13, %p773_p12 }
  0x1e   :  { %p776_p1 = pnand %p775_p0, %p769_p11 }
  0x20   :  { %779 = shalt.err (!%p776_p1)
}
  0x21   :  { %s810_s1 = smov 128   ;;  %s811_s15 = smov 8  }
  0x22   :  { %38 = dma.hbm_to_vmem [thread:$0]  %s946_s3, 1664, %s847_s21, [#allocation6], %s810_s1, %s810_s1, %s811_s15  }
  0x23   :  { %802 = dma.done.wait [#allocation3], 128  }
  0x24   :  { %803 = vsyncadd [#allocation3], 4294967168 }
  0x25   :  { %804 = dma.done.wait [#allocation6], 1664  }
  0x26   :  { %805 = vsyncadd [#allocation6], 4294965632  ;;  %v812_v0 = vmov 0.0   ;;  %vm813_vm0 = vmmov 0   ;;  %v814_v1 = vmov 0   ;;  %vm70_vm1 = vcmask 64512  }
  0x27   :  { %660 = vmatprep.subr.mxu0 %v812_v0  ;;  %662 = vmatprep.mubr.msk.f32.mxu0 %vm813_vm0, %v812_v0  ;;  %v59_v2 = vld [vmem:[#allocation5] sm:$0xff]  ;;  %v48_v3 = vld [vmem:[#allocation2] sm:$0xff]  ;;  %v150_v5 = vld [vmem:[#allocation5 + $0x8] sm:$0xff]  ;;  %v815_v8 = vmov 0.0|0.0   ;;  %vm156_vm2 = vcmask 130048   ;;  %vm463_vm3 = vcmask 261120  }
  0x28   :  { %731 = vset.pattern.permute.xlu0 %v814_v1  ;;  %683 = vmatprep.mubr.msk.f32.mxu1 %vm813_vm0, %v812_v0  ;;  %v49_v4 = vld [vmem:[%s945_s2] sm:$0xff]  ;;  %v151_v6 = vld [vmem:[#allocation5 + $0x10] sm:$0xff]  ;;  %v232_v19 = vld [vmem:[#allocation5 + $0x20] sm:$0xff]  ;;  %s816_s12 = smov [#allocation7]  }
  0x29   :  { %661 = vmatpush3.msra.mxu0 %v59_v2  ;;  %62 = vperm.xlu0 %731, %v49_v4   ;;  %v705_v7 = vpack.c.bf16 %v151_v6, %v150_v5  ;;  %v630_v9 = vld [vmem:[%s947_s4] ss:$0 sm:$0xff]  ;;  %v632_v12 = vld [vmem:[%s947_s4 + $0x1] ss:$0 sm:$0xff]  ;;  %v310_v20 = vld [vmem:[#allocation5 + $0x28] sm:$0xff]  ;;  %s620_s13 = sshll.u32 %s816_s12, 4  ;;  %s621_s13 = int_to_ptr.vmem [resolvable:$true] %s620_s13 }
  0x2a   :  { %663 = vmatmul.mubr.msk.f32.vlgmr.msra.gmra.mrb[0].mxu0 %vm70_vm1, %v48_v3  ;;  %704 = vmatprep.subr.bf16.mxu0 %v815_v8  ;;  %v231_v18 = vld [vmem:[#allocation5 + $0x18] sm:$0xff]  ;;  %v311_v22 = vld [vmem:[#allocation5 + $0x30] sm:$0xff]  ;;  %v389_v30 = vld [vmem:[#allocation5 + $0x40] sm:$0xff]  ;;  %s780_s14 = scalar_lea.vmem %s621_s13, 128  ;;  %p785_p3 = scmp.lt.s32.totalorder %s621_s13, %s621_s13 }
  0x2b   :  { %669 = vmatprep.mubr.msk.f32.mxu0 %vm813_vm0, %v812_v0  ;;  %710 = vmatprep.subr.bf16.mxu1 %v815_v8  ;;  %v708_v21 = vpack.c.bf16 %v232_v19, %v231_v18  ;;  %v711_v23 = vpack.c.bf16 %v311_v22, %v310_v20  ;;  %v633_v24 = vld [vmem:[%s947_s4 + $0x2] ss:$0 sm:$0xff]  ;;  %v635_v32 = vld [vmem:[%s947_s4 + $0x3] ss:$0 sm:$0xff]  ;;  %v637_v35 = vld [vmem:[%s947_s4 + $0x4] ss:$0 sm:$0xff]  ;;  %p781_p2 = scmp.ne.s32.totalorder %s621_s13, %s780_s14  ;;  %p786_p4 = scmp.lt.s32.totalorder %s780_s14, %s780_s14 }
  0x2c   :  { %706 = vmatpush3.bf16.msra.mxu0 %v705_v7  ;;  %v388_v29 = vld [vmem:[#allocation5 + $0x38] sm:$0xff]  ;;  %v500_v43 = vld [vmem:[#allocation5 + $0x48] sm:$0xff]  ;;  %v501_v44 = vld [vmem:[#allocation5 + $0x50] sm:$0xff] }
  0x2d   :  { %707 = vmatprep.subr.bf16.mxu0 %v815_v8  ;;  %712 = vmatpush3.bf16.msra.mxu1 %v711_v23  ;;  %v714_v31 = vpack.c.bf16 %v389_v30, %v388_v29  ;;  %v905_v33 = vld [vmem:[%s943_s0] sm:$0xff]  ;;  %v717_v45 = vpack.c.bf16 %v501_v44, %v500_v43  ;;  %v503_v47 = vld [vmem:[#allocation5 + $0x60] sm:$0xff]  ;;  %p787_p5 = por %p786_p4, %p785_p3 }
  0x2e   :  { %716 = vmatprep.subr.bf16.mxu1 %v815_v8  ;;  %v502_v46 = vld [vmem:[#allocation5 + $0x58] sm:$0xff] }
  0x2f   :  { %v720_v48 = vpack.c.bf16 %v503_v47, %v502_v46  ;;  %v57_v46 = vld [vmem:[%s947_s4 + $0x7] sm:$0x1]  ;;  %p788_p6 = pnand %p787_p5, %p781_p2 }
  0xa8   :  { %v63_v10 = vpop.permute.xlu0 %62 }
  0xa9   :  { %v69_v11 = vmul.f32 %v630_v9, %v63_v10  ;;  %v55_v10 = vld [vmem:[%s947_s4 + $0x5] sm:$0x1] }
  0xfd   :  { %v140_v13 = vpop.f32.mrb[0].mxu0 }
  0xfe   :  { %v141_v14 = vadd.f32 %v140_v13, %v69_v11  ;;  %v664_v15 = vpop.f32.mrb[1].mxu0 }
 0x100   :  { %v148_v16 = vadd.f32 %v632_v12, %v141_v14  ;;  %v56_v14 = vld [vmem:[%s947_s4 + $0x6] sm:$0x1] }
 0x102   :  { %v149_v17 = vmax.f32 %v148_v16, 0.0 }
 0x104   :  { %670 = vmatmul.mubr.msk.f32.vlgmr.msra.gmra.mrb[2].mxu0 %vm156_vm2, %v149_v17 }
 0x105   :  { %676 = vmatprep.mubr.msk.f32.mxu0 %vm813_vm0, %v812_v0  ;;  %709 = vmatpush3.bf16.msra.mxu0 %v708_v21 }
 0x106   :  { %713 = vmatprep.subr.bf16.mxu0 %v815_v8 }
 0x1d7   :  { %v226_v25 = vpop.f32.mrb[2].mxu0 }
 0x1d8   :  { %v227_v26 = vadd.f32 %v633_v24, %v226_v25  ;;  %v671_v27 = vpop.f32.mrb[3].mxu0 }
 0x1da   :  { %v230_v28 = vmax.f32 %v227_v26, 0.0 }
 0x1dc   :  { %677 = vmatmul.mubr.msk.f32.vlgmr.msra.gmra.mrb[4].mxu0 %vm156_vm2, %v230_v28  ;;  %684 = vmatmul.mubr.msk.f32.vlgmr.msra.gmra.mrb[0].mxu1 %vm156_vm2, %v230_v28 }
 0x1dd   :  { %690 = vmatprep.mubr.msk.f32.mxu0 %vm813_vm0, %v812_v0  ;;  %701 = vmatprep.mubr.msk.f32.mxu1 %vm813_vm0, %v812_v0 }
 0x1de   :  { %715 = vmatpush3.bf16.msra.mxu0 %v714_v31  ;;  %718 = vmatpush3.bf16.msra.mxu1 %v717_v45 }
 0x1df   :  { %719 = vmatprep.subr.bf16.mxu1 %v815_v8  ;;  %v489_v8 = vlaneseq }
 0x1e1   :  { %v490_v9 = vshrl.u32 %v489_v8, 7 }
 0x1e2   :  { %721 = vmatpush3.bf16.msra.mxu1 %v720_v48 }
 0x1e3   :  { %v491_v11 = vsub.s32 0, %v490_v9 }
 0x2af   :  { %v306_v34 = vpop.f32.mrb[4].mxu0  ;;  %v382_v36 = vpop.f32.mrb[0].mxu1 }
 0x2b0   :  { %v307_v37 = vadd.f32 %v635_v32, %v306_v34  ;;  %v678_v38 = vpop.f32.mrb[5].mxu0  ;;  %v685_v39 = vpop.f32.mrb[1].mxu1  ;;  %v383_v41 = vadd.f32 %v637_v35, %v382_v36 }
 0x2b2   :  { %v386_v40 = vmul.f32 %v307_v37, %v905_v33 }
 0x2b4   :  { %v387_v42 = vadd.f32 %v386_v40, %v383_v41 }
 0x2b6   :  { %691 = vmatmul.mubr.msk.f32.vlgmr.msra.gmra.mrb[6].mxu0 %vm156_vm2, %v387_v42 }
 0x389   :  { %v459_v49 = vpop.f32.mrb[6].mxu0 }
 0x38a   :  { %v464_v50 = vsel %vm463_vm3, %v459_v49, 0.0  ;;  %v472_v51 = vmul.f32 %v459_v49, %v459_v49  ;;  %v692_v52 = vpop.f32.mrb[7].mxu0 }
 0x38b   :  { %v465_v53 = vrot.slane %v464_v50, 4 }
 0x38c   :  { %v473_v54 = vsel %vm463_vm3, %v472_v51, 0.0 }
 0x38d   :  { %v466_v55 = vadd.f32 %v465_v53, %v464_v50  ;;  %v474_v56 = vrot.slane %v473_v54, 4 }
 0x38f   :  { %v467_v57 = vrot.slane %v466_v55, 2  ;;  %v475_v58 = vadd.f32 %v474_v56, %v473_v54 }
 0x391   :  { %v468_v59 = vadd.f32 %v467_v57, %v466_v55  ;;  %v476_v60 = vrot.slane %v475_v58, 2 }
 0x393   :  { %v469_v61 = vrot.slane %v468_v59, 1  ;;  %v477_v62 = vadd.f32 %v476_v60, %v475_v58 }
 0x395   :  { %v470_v63 = vadd.f32 %v469_v61, %v468_v59  ;;  %v478_v0 = vrot.slane %v477_v62, 1 }
 0x397   :  { %v471_v1 = vmul.f32 0.125, %v470_v63  ;;  %v479_v2 = vadd.f32 %v478_v0, %v477_v62 }
 0x399   :  { %v480_v3 = vmul.f32 0.125, %v479_v2  ;;  %v481_v4 = vmul.f32 %v471_v1, %v471_v1 }
 0x39b   :  { %v482_v5 = vsub.f32 %v480_v3, %v481_v4 }
 0x39d   :  { %v483_v6 = vmax.f32 %v482_v5, 0.0 }
 0x39f   :  { %v484_v7 = vadd.f32 1e-05, %v483_v6 }
 0x3a1   :  { %732 = vrsqrt.f32 %v484_v7 }
 0x3ab   :  { %v733_v12 = vpop.eup %732 }
 0x3ac   :  { %v486_v13 = vmul.f32 %v733_v12, %v55_v10 }
 0x3ae   :  { %v487_v15 = vmul.f32 %v486_v13, %v471_v1  ;;  %v492_v16 = vrot.slane %v486_v13, %v491_v11 }
 0x3b0   :  { %v488_v17 = vsub.f32 %v56_v14, %v487_v15  ;;  %v493_v18 = vmul.f32 %v492_v16, %v459_v49  ;;  %v58_v49 = vld [vmem:[%s947_s4 + $0x8] sm:$0x1] }
 0x3b2   :  { %v497_v19 = vrot.slane %v488_v17, %v491_v11 }
 0x3b4   :  { %v498_v20 = vadd.f32 %v497_v19, %v493_v18 }
 0x3b6   :  { %v499_v21 = vmax.f32 %v498_v20, 0.0 }
 0x3b8   :  { %702 = vmatmul.mubr.msk.f32.vlgmr.msra.gmra.mrb[2].mxu1 %vm463_vm3, %v499_v21 }
 0x48b   :  { %v573_v22 = vpop.f32.mrb[2].mxu1 }
 0x48c   :  { %v577_v23 = vsel %vm156_vm2, %v573_v22, 0.0  ;;  %v585_v24 = vmul.f32 %v573_v22, %v573_v22  ;;  %v703_v25 = vpop.f32.mrb[3].mxu1 }
 0x48d   :  { %v578_v26 = vrot.slane %v577_v23, 4 }
 0x48e   :  { %v586_v27 = vsel %vm156_vm2, %v585_v24, 0.0 }
 0x48f   :  { %v579_v28 = vadd.f32 %v578_v26, %v577_v23  ;;  %v587_v29 = vrot.slane %v586_v27, 4 }
 0x491   :  { %v580_v30 = vrot.slane %v579_v28, 2  ;;  %v588_v31 = vadd.f32 %v587_v29, %v586_v27 }
 0x493   :  { %v581_v32 = vadd.f32 %v580_v30, %v579_v28  ;;  %v589_v34 = vrot.slane %v588_v31, 2 }
 0x495   :  { %v582_v35 = vrot.slane %v581_v32, 1  ;;  %v590_v36 = vadd.f32 %v589_v34, %v588_v31 }
 0x497   :  { %v583_v37 = vadd.f32 %v582_v35, %v581_v32  ;;  %v591_v38 = vrot.slane %v590_v36, 1 }
 0x499   :  { %v584_v39 = vmul.f32 0.125, %v583_v37  ;;  %v592_v40 = vadd.f32 %v591_v38, %v590_v36 }
 0x49b   :  { %v593_v41 = vmul.f32 0.125, %v592_v40  ;;  %v594_v42 = vmul.f32 %v584_v39, %v584_v39 }
 0x49d   :  { %v595_v43 = vsub.f32 %v593_v41, %v594_v42 }
 0x49f   :  { %v596_v44 = vmax.f32 %v595_v43, 0.0 }
 0x4a1   :  { %v597_v45 = vadd.f32 1e-05, %v596_v44 }
 0x4a3   :  { %734 = vrsqrt.f32 %v597_v45 }
 0x4ad   :  { %v735_v47 = vpop.eup %734 }
 0x4ae   :  { %v599_v48 = vmul.f32 %v735_v47, %v57_v46 }
 0x4b0   :  { %v600_v50 = vmul.f32 %v599_v48, %v584_v39  ;;  %v605_v51 = vrot.slane %v599_v48, %v491_v11 }
 0x4b2   :  { %v601_v52 = vsub.f32 %v58_v49, %v600_v50  ;;  %v606_v53 = vmul.f32 %v605_v51, %v573_v22 }
 0x4b4   :  { %v610_v54 = vrot.slane %v601_v52, %v491_v11 }
 0x4b6   :  { %v611_v55 = vadd.f32 %v610_v54, %v606_v53 }
 0x4b8   :  { %v612_v56 = vadd.f32 %v611_v55, %v905_v33 }
 0x4ba   :  { %613 = vst.msk [vmem:[#allocation7] sm:$0xff] %vm156_vm2, %v612_v56 }
 0x4bb   :  { %791 = shalt.err (!%p788_p6)
}
 0x4bc   :  { %s792_s15 = scalar_lea.hbm %s948_s5, 128 }
 0x4bd   :  { %p793_p7 = scmp.ne.s32.totalorder %s948_s5, %s792_s15  ;;  %p796_p8 = scmp.lt.u32.totalorder %s792_s15, %s948_s5 }
 0x4bf   :  { %p798_p9 = pnand %p796_p8, %p793_p7 }
 0x4c1   :  { %801 = shalt.err (!%p798_p9)
}
 0x4c2   :  { %623 = dma.vmem_to_hbm [thread:$0]  %s621_s13, 128, %s948_s5, [#allocation4]  }
 0x4c3   :  { %806 = dma.done.wait [#allocation4], 128  }
 0x4c4   :  { %807 = vsyncadd [#allocation4], 4294967168 }
 0x4c5   :  { %627 = vsyncpa [#allocation3], 1 }
 0x4c6   :  { %628 = vsyncpa [#allocation6], 1 }
 0x4c7   :  { %629 = vsyncpa [#allocation4], 1 }

</bundles_post_ra>
